<compile_context>
chip_gen: v5e
topology: v5e:2x2
jax: 0.10.0
libtpu: 0.0.40
codegen_flags: <defaults>
</compile_context>

<pallas_src>
import math

import jax
import jax.numpy as jnp
import numpy as np
from jax import lax
from jax.experimental import pallas as pl
from jax.experimental.pallas import tpu as pltpu


def _round_up(a: int, b: int) -> int:
    return (a + b - 1) // b * b


def _make_kernel(prior_std: float, out_f: int, in_f: int, tn: int, tk: int,
                 mask_rows: bool, mask_cols: bool):
    prior_var = float(prior_std) ** 2
    log_prior_var = math.log(prior_var)
    inv_prior_var = 1.0 / prior_var

    def softplus(v):
        # Stable softplus: identity above threshold (matches F.softplus behaviour).
        return jnp.where(v > 20.0, v, jnp.log1p(jnp.exp(jnp.minimum(v, 20.0))))

    def kl_elem(mu, std):
        # 0.5 * (log(prior_var/var) + (var + mu^2)/prior_var - 1), with constants folded
        # and the per-element divide removed.
        var = std * std
        return 0.5 * ((log_prior_var - 2.0 * jnp.log(std))
                      + (var + mu * mu) * inv_prior_var - 1.0)

    def kernel(x_ref, wmu_ref, wrho_ref, weps_ref,
               bmu_ref, brho_ref, beps_ref,
               out_ref, kl_ref, acc_ref, kl_acc_ref):
        n = pl.program_id(0)
        k = pl.program_id(1)
        nk = pl.num_programs(1)

        @pl.when(k == 0)
        def _():
            acc_ref[...] = jnp.zeros_like(acc_ref)
            kl_acc_ref[...] = jnp.zeros_like(kl_acc_ref)

        wmu = wmu_ref[...]
        w_std = softplus(wrho_ref[...])
        w = wmu + w_std * weps_ref[...]                  # sampled weight tile (tn, tk)

        # acc += x_block @ w^T  (contract x dim 1 with w dim 1; no transpose materialized)
        acc_ref[...] += lax.dot_general(
            x_ref[...], w,
            dimension_numbers=(((1,), (1,)), ((), ())),
            preferred_element_type=jnp.float32)

        # Weight KL for this tile (zero out padding rows/cols, if any).
        kl_w = kl_elem(wmu, w_std)
        if mask_rows or mask_cols:
            masks = []
            if mask_rows:
                row = lax.broadcasted_iota(jnp.int32, (tn, tk), 0) + n * tn
                masks.append(row < out_f)
            if mask_cols:
                col = lax.broadcasted_iota(jnp.int32, (tn, tk), 1) + k * tk
                masks.append(col < in_f)
            ok = masks[0] if len(masks) == 1 else masks[0] & masks[1]
            kl_w = jnp.where(ok, kl_w, 0.0)
        kl_acc_ref[...] = kl_acc_ref[...] + jnp.sum(kl_w)

        @pl.when(k == nk - 1)
        def _():
            bmu = bmu_ref[...]
            b_std = softplus(brho_ref[...])
            b = bmu + b_std * beps_ref[...]              # sampled bias tile (1, tn)
            out_ref[...] = (acc_ref[...] + b).astype(out_ref.dtype)

            kl_b = kl_elem(bmu, b_std)
            if mask_rows:
                bcol = lax.broadcasted_iota(jnp.int32, (1, tn), 1) + n * tn
                kl_b = jnp.where(bcol < out_f, kl_b, 0.0)
            total = kl_acc_ref[...] + jnp.sum(kl_b)      # (1, 1)

            lane = lax.broadcasted_iota(jnp.int32, (1, 128), 1)
            kl_ref[...] = jnp.where(lane == 0, total, 0.0)

    return kernel


def bayesian_linear_forward(x, weight_mu, weight_rho, bias_mu, bias_rho,
                            weight_eps, bias_eps, prior_std: float = 1.0,
                            tn_pref: int = 256, tk_pref: int = 512):
    """Returns (output, kl_loss), matching BayesianLinear.forward semantics."""
    out_f, in_f = weight_mu.shape
    batch = x.shape[0]

    # 128-aligned, lane-dense tiles (sized conservatively so double-buffered weight
    # tiles stay a few MiB: safe on v7x's 64 MiB VMEM, with room to grow on v5e/v6e).
    tn = min(tn_pref, _round_up(out_f, 128))
    tk = min(tk_pref, _round_up(in_f, 128))
    n_pad = _round_up(out_f, tn)
    k_pad = _round_up(in_f, tk)
    gn = n_pad // tn
    gk = k_pad // tk

    def pad2(a, rows, cols):
        a = a.astype(jnp.float32)
        return jnp.pad(a, ((0, rows - a.shape[0]), (0, cols - a.shape[1])))

    x_p    = pad2(x, batch, k_pad)
    wmu_p  = pad2(weight_mu, n_pad, k_pad)
    wrho_p = pad2(weight_rho, n_pad, k_pad)
    weps_p = pad2(weight_eps, n_pad, k_pad)
    bmu_p  = pad2(bias_mu.reshape(1, out_f), 1, n_pad)
    brho_p = pad2(bias_rho.reshape(1, out_f), 1, n_pad)
    beps_p = pad2(bias_eps.reshape(1, out_f), 1, n_pad)

    kernel = _make_kernel(prior_std, out_f, in_f, tn, tk,
                          mask_rows=(n_pad != out_f),
                          mask_cols=(k_pad != in_f))

    cost = pl.CostEstimate(
        flops=2 * batch * out_f * in_f,
        transcendentals=3 * out_f * in_f + 3 * out_f,
        bytes_accessed=4 * (3 * n_pad * k_pad + gn * batch * k_pad
                            + batch * n_pad + 3 * n_pad),
    )

    out_p, kl_parts = pl.pallas_call(
        kernel,
        out_shape=(
            jax.ShapeDtypeStruct((batch, n_pad), jnp.float32),
            jax.ShapeDtypeStruct((1, gn * 128), jnp.float32),
        ),
        grid_spec=pltpu.PrefetchScalarGridSpec(
            num_scalar_prefetch=0,
            grid=(gn, gk),
            in_specs=[
                pl.BlockSpec((batch, tk), lambda n, k: (0, k)),   # x
                pl.BlockSpec((tn, tk),    lambda n, k: (n, k)),   # weight_mu
                pl.BlockSpec((tn, tk),    lambda n, k: (n, k)),   # weight_rho
                pl.BlockSpec((tn, tk),    lambda n, k: (n, k)),   # weight_eps
                pl.BlockSpec((1, tn),     lambda n, k: (0, n)),   # bias_mu
                pl.BlockSpec((1, tn),     lambda n, k: (0, n)),   # bias_rho
                pl.BlockSpec((1, tn),     lambda n, k: (0, n)),   # bias_eps
            ],
            out_specs=[
                pl.BlockSpec((batch, tn), lambda n, k: (0, n)),   # output tile
                pl.BlockSpec((1, 128),    lambda n, k: (0, n)),   # KL partial per N tile
            ],
            scratch_shapes=[
                pltpu.VMEM((batch, tn), jnp.float32),             # matmul accumulator
                pltpu.VMEM((1, 1), jnp.float32),                  # KL accumulator
            ],
        ),
        compiler_params=pltpu.CompilerParams(
            dimension_semantics=("parallel", "arbitrary"),
            vmem_limit_bytes=48 * 1024 * 1024,
        ),
        cost_estimate=cost,
    )(x_p, wmu_p, wrho_p, weps_p, bmu_p, brho_p, beps_p)

    out = out_p[:, :out_f]
    kl_loss = jnp.sum(kl_parts)
    return out, kl_loss


def _reference(x, weight_mu, weight_rho, bias_mu, bias_rho,
               weight_eps, bias_eps, prior_std=1.0):
    """Pure-JAX reference mirroring the PyTorch module (same eps supplied)."""
    w_std = jnp.log1p(jnp.exp(weight_rho))
    b_std = jnp.log1p(jnp.exp(bias_rho))
    w = weight_mu + w_std * weight_eps
    b = bias_mu + b_std * bias_eps
    out = x @ w.T + b

    prior_var = prior_std ** 2

    def kl(mu, std):
        var = std ** 2
        return jnp.sum(0.5 * (jnp.log(prior_var / var) + (var + mu ** 2) / prior_var - 1.0))

    return out, kl(weight_mu, w_std) + kl(bias_mu, b_std)


if __name__ == "__main__":
    # Small shapes consistent with the module: batch=8, in_features=32, out_features=16.
    batch, in_features, out_features = 8, 32, 16
    prior_std = 1.0

    root = jax.random.PRNGKey(0)
    k_x, k_wmu, k_wrho, k_bmu, k_brho, k_weps, k_beps = jax.random.split(root, 7)

    # Deterministic "init": randn * 0.1, like the PyTorch __init__.
    x = jax.random.normal(k_x, (batch, in_features), jnp.float32)
    weight_mu = 0.1 * jax.random.normal(k_wmu, (out_features, in_features), jnp.float32)
    weight_rho = 0.1 * jax.random.normal(k_wrho, (out_features, in_features), jnp.float32)
    bias_mu = 0.1 * jax.random.normal(k_bmu, (out_features,), jnp.float32)
    bias_rho = 0.1 * jax.random.normal(k_brho, (out_features,), jnp.float32)

    # Fresh noise per forward (torch.randn_like semantics), shared with the reference
    # so the check is bit-meaningful.
    weight_eps = jax.random.normal(k_weps, (out_features, in_features), jnp.float32)
    bias_eps = jax.random.normal(k_beps, (out_features,), jnp.float32)

    out, kl_loss = bayesian_linear_forward(
        x, weight_mu, weight_rho, bias_mu, bias_rho, weight_eps, bias_eps, prior_std)
    out = jax.block_until_ready(out)
    kl_loss = jax.block_until_ready(kl_loss)

    ref_out, ref_kl = _reference(
        x, weight_mu, weight_rho, bias_mu, bias_rho, weight_eps, bias_eps, prior_std)

    assert np.allclose(np.asarray(out), np.asarray(ref_out), atol=1e-4, rtol=1e-4), \
        "output mismatch"
    assert np.allclose(np.asarray(kl_loss), np.asarray(ref_kl), atol=1e-3, rtol=1e-4), \
        "kl mismatch"

    print("KERNEL_OK")
</pallas_src>

<mosaic_0001>
module attributes {stable_mosaic.version = 11 : i64} {
  func.func @kernel(%arg0: i32, %arg1: i32, %arg2: memref<8x128xf32, #tpu.memory_space<vmem>>, %arg3: memref<128x128xf32, #tpu.memory_space<vmem>>, %arg4: memref<128x128xf32, #tpu.memory_space<vmem>>, %arg5: memref<128x128xf32, #tpu.memory_space<vmem>>, %arg6: memref<1x128xf32, #tpu.memory_space<vmem>>, %arg7: memref<1x128xf32, #tpu.memory_space<vmem>>, %arg8: memref<1x128xf32, #tpu.memory_space<vmem>>, %arg9: memref<8x128xf32, #tpu.memory_space<vmem>>, %arg10: memref<1x128xf32, #tpu.memory_space<vmem>>, %arg11: memref<8x128xf32, #tpu.memory_space<vmem>>, %arg12: memref<1x1xf32, #tpu.memory_space<vmem>>) attributes {dimension_semantics = [#tpu.dimension_semantics<parallel>, #tpu.dimension_semantics<arbitrary>], iteration_bounds = array<i64: 1, 1>, scalar_prefetch = 0 : i64, scratch_operands = 2 : i64, tpu.core_type = #tpu.core_type<tc>, window_params = [{transform_indices = @transform_0, window_bounds = array<i64: 8, 128>}, {transform_indices = @transform_1, window_bounds = array<i64: 128, 128>}, {transform_indices = @transform_2, window_bounds = array<i64: 128, 128>}, {transform_indices = @transform_3, window_bounds = array<i64: 128, 128>}, {transform_indices = @transform_4, window_bounds = array<i64: 1, 128>}, {transform_indices = @transform_5, window_bounds = array<i64: 1, 128>}, {transform_indices = @transform_6, window_bounds = array<i64: 1, 128>}, {transform_indices = @transform_7, window_bounds = array<i64: 8, 128>}, {transform_indices = @transform_8, window_bounds = array<i64: 1, 128>}]} {
    %c0_i32 = arith.constant 0 : i32
    %0 = arith.cmpi eq, %arg1, %c0_i32 : i32
    %1 = arith.extui %0 : i1 to i32
    %c0_i32_0 = arith.constant 0 : i32
    %2 = arith.cmpi ne, %1, %c0_i32_0 : i32
    scf.if %2 {
      %cst_28 = arith.constant 0.000000e+00 : f32
      %61 = vector.broadcast %cst_28 : f32 to vector<8x128xf32>
      %c0_29 = arith.constant 0 : index
      %c0_30 = arith.constant 0 : index
      %62 = vector.load %arg11[%c0_29, %c0_30] : memref<8x128xf32, #tpu.memory_space<vmem>>, vector<8x128xf32>
      tpu.vector_store %arg11[%c0_29, %c0_30], %61 {strides = array<i32>} : memref<8x128xf32, #tpu.memory_space<vmem>>, vector<8x128xf32>,
      %cst_31 = arith.constant 0.000000e+00 : f32
      %63 = vector.broadcast %cst_31 : f32 to vector<1x1xf32>
      %c0_32 = arith.constant 0 : index
      %c0_33 = arith.constant 0 : index
      %64 = vector.load %arg12[%c0_32, %c0_33] : memref<1x1xf32, #tpu.memory_space<vmem>>, vector<1x1xf32>
      tpu.vector_store %arg12[%c0_32, %c0_33], %63 {strides = array<i32>} : memref<1x1xf32, #tpu.memory_space<vmem>>, vector<1x1xf32>,
    } else {
    }
    %c0 = arith.constant 0 : index
    %c0_1 = arith.constant 0 : index
    %3 = vector.load %arg3[%c0, %c0_1] : memref<128x128xf32, #tpu.memory_space<vmem>>, vector<128x128xf32>
    %c0_2 = arith.constant 0 : index
    %c0_3 = arith.constant 0 : index
    %4 = vector.load %arg4[%c0_2, %c0_3] : memref<128x128xf32, #tpu.memory_space<vmem>>, vector<128x128xf32>
    %cst = arith.constant 2.000000e+01 : f32
    %5 = vector.broadcast %cst : f32 to vector<128x128xf32>
    %6 = arith.cmpf ogt, %4, %5 : vector<128x128xf32>
    %cst_4 = arith.constant 2.000000e+01 : f32
    %7 = vector.broadcast %cst_4 : f32 to vector<128x128xf32>
    %8 = arith.minimumf %4, %7 : vector<128x128xf32>
    %9 = math.exp %8 : vector<128x128xf32>
    %10 = math.log1p %9 : vector<128x128xf32>
    %11 = arith.select %6, %4, %10 : vector<128x128xi1>, vector<128x128xf32>
    %c0_5 = arith.constant 0 : index
    %c0_6 = arith.constant 0 : index
    %12 = vector.load %arg5[%c0_5, %c0_6] : memref<128x128xf32, #tpu.memory_space<vmem>>, vector<128x128xf32>
    %13 = arith.mulf %11, %12 : vector<128x128xf32>
    %14 = arith.addf %3, %13 : vector<128x128xf32>
    %c0_7 = arith.constant 0 : index
    %c0_8 = arith.constant 0 : index
    %15 = vector.load %arg11[%c0_7, %c0_8] : memref<8x128xf32, #tpu.memory_space<vmem>>, vector<8x128xf32>
    %c0_9 = arith.constant 0 : index
    %c0_10 = arith.constant 0 : index
    %16 = vector.load %arg2[%c0_9, %c0_10] : memref<8x128xf32, #tpu.memory_space<vmem>>, vector<8x128xf32>
    %cst_11 = arith.constant dense<0.000000e+00> : vector<8x128xf32>
    %17 = tpu.matmul %16, %14, %cst_11 {dimension_numbers = #tpu.dot_dimension_numbers<[1], [1], [0], [0], [0, 0, 1, 0], [], []>} : vector<8x128xf32>, vector<128x128xf32>, vector<8x128xf32> -> vector<8x128xf32>
    %18 = arith.addf %15, %17 : vector<8x128xf32>
    %c0_12 = arith.constant 0 : index
    %c0_13 = arith.constant 0 : index
    %19 = vector.load %arg11[%c0_12, %c0_13] : memref<8x128xf32, #tpu.memory_space<vmem>>, vector<8x128xf32>
    tpu.vector_store %arg11[%c0_12, %c0_13], %18 {strides = array<i32>} : memref<8x128xf32, #tpu.memory_space<vmem>>, vector<8x128xf32>,
    %20 = arith.mulf %11, %11 : vector<128x128xf32>
    %21 = math.log %11 : vector<128x128xf32>
    %cst_14 = arith.constant 2.000000e+00 : f32
    %22 = vector.broadcast %cst_14 : f32 to vector<128x128xf32>
    %23 = arith.mulf %22, %21 : vector<128x128xf32>
    %cst_15 = arith.constant 0.000000e+00 : f32
    %24 = vector.broadcast %cst_15 : f32 to vector<128x128xf32>
    %25 = arith.subf %24, %23 : vector<128x128xf32>
    %26 = arith.mulf %3, %3 : vector<128x128xf32>
    %27 = arith.addf %20, %26 : vector<128x128xf32>
    %cst_16 = arith.constant 1.000000e+00 : f32
    %28 = vector.broadcast %cst_16 : f32 to vector<128x128xf32>
    %29 = arith.mulf %27, %28 : vector<128x128xf32>
    %30 = arith.addf %25, %29 : vector<128x128xf32>
    %cst_17 = arith.constant 1.000000e+00 : f32
    %31 = vector.broadcast %cst_17 : f32 to vector<128x128xf32>
    %32 = arith.subf %30, %31 : vector<128x128xf32>
    %cst_18 = arith.constant 5.000000e-01 : f32
    %33 = vector.broadcast %cst_18 : f32 to vector<128x128xf32>
    %34 = arith.mulf %33, %32 : vector<128x128xf32>
    %35 = tpu.iota {dimensions = array<i32: 0>} : vector<128x128xi32>
    %c128_i32 = arith.constant 128 : i32
    %36 = arith.muli %arg0, %c128_i32 : i32
    %37 = vector.broadcast %36 : i32 to vector<128x128xi32>
    %38 = arith.addi %35, %37 : vector<128x128xi32>
    %c16_i32 = arith.constant 16 : i32
    %39 = vector.broadcast %c16_i32 : i32 to vector<128x128xi32>
    %40 = arith.cmpi slt, %38, %39 : vector<128x128xi32>
    %41 = tpu.iota {dimensions = array<i32: 1>} : vector<128x128xi32>
    %c128_i32_19 = arith.constant 128 : i32
    %42 = arith.muli %arg1, %c128_i32_19 : i32
    %43 = vector.broadcast %42 : i32 to vector<128x128xi32>
    %44 = arith.addi %41, %43 : vector<128x128xi32>
    %c32_i32 = arith.constant 32 : i32
    %45 = vector.broadcast %c32_i32 : i32 to vector<128x128xi32>
    %46 = arith.cmpi slt, %44, %45 : vector<128x128xi32>
    %47 = arith.andi %40, %46 : vector<128x128xi1>
    %cst_20 = arith.constant 0.000000e+00 : f32
    %48 = vector.broadcast %cst_20 : f32 to vector<128x128xf32>
    %49 = arith.select %47, %34, %48 : vector<128x128xi1>, vector<128x128xf32>
    %c0_21 = arith.constant 0 : index
    %c0_22 = arith.constant 0 : index
    %50 = vector.load %arg12[%c0_21, %c0_22] : memref<1x1xf32, #tpu.memory_space<vmem>>, vector<1x1xf32>
    %51 = vector.shape_cast %49 : vector<128x128xf32> to vector<1x128x128xf32>
    %cst_23 = arith.constant dense<0.000000e+00> : vector<1xf32>
    %52 = vector.multi_reduction <add>, %51, %cst_23 [1, 2] : vector<1x128x128xf32> to vector<1xf32>
    %53 = vector.shape_cast %52 : vector<1xf32> to vector<1x1x1xf32>
    %54 = vector.extract %53[0, 0, 0] : f32 from vector<1x1x1xf32>
    %55 = vector.broadcast %54 : f32 to vector<1x1xf32>
    %56 = arith.addf %50, %55 : vector<1x1xf32>
    %c0_24 = arith.constant 0 : index
    %c0_25 = arith.constant 0 : index
    %57 = vector.load %arg12[%c0_24, %c0_25] : memref<1x1xf32, #tpu.memory_space<vmem>>, vector<1x1xf32>
    tpu.vector_store %arg12[%c0_24, %c0_25], %56 {strides = array<i32>} : memref<1x1xf32, #tpu.memory_space<vmem>>, vector<1x1xf32>,
    %c0_i32_26 = arith.constant 0 : i32
    %58 = arith.cmpi eq, %arg1, %c0_i32_26 : i32
    %59 = arith.extui %58 : i1 to i32
    %c0_i32_27 = arith.constant 0 : i32
    %60 = arith.cmpi ne, %59, %c0_i32_27 : i32
    scf.if %60 {
      %c0_28 = arith.constant 0 : index
      %c0_29 = arith.constant 0 : index
      %61 = vector.load %arg6[%c0_28, %c0_29] : memref<1x128xf32, #tpu.memory_space<vmem>>, vector<1x128xf32>
      %c0_30 = arith.constant 0 : index
      %c0_31 = arith.constant 0 : index
      %62 = vector.load %arg7[%c0_30, %c0_31] : memref<1x128xf32, #tpu.memory_space<vmem>>, vector<1x128xf32>
      %cst_32 = arith.constant 2.000000e+01 : f32
      %63 = vector.broadcast %cst_32 : f32 to vector<1x128xf32>
      %64 = arith.cmpf ogt, %62, %63 : vector<1x128xf32>
      %cst_33 = arith.constant 2.000000e+01 : f32
      %65 = vector.broadcast %cst_33 : f32 to vector<1x128xf32>
      %66 = arith.minimumf %62, %65 : vector<1x128xf32>
      %67 = math.exp %66 : vector<1x128xf32>
      %68 = math.log1p %67 : vector<1x128xf32>
      %69 = arith.select %64, %62, %68 : vector<1x128xi1>, vector<1x128xf32>
      %c0_34 = arith.constant 0 : index
      %c0_35 = arith.constant 0 : index
      %70 = vector.load %arg8[%c0_34, %c0_35] : memref<1x128xf32, #tpu.memory_space<vmem>>, vector<1x128xf32>
      %71 = arith.mulf %69, %70 : vector<1x128xf32>
      %72 = arith.addf %61, %71 : vector<1x128xf32>
      %c0_36 = arith.constant 0 : index
      %c0_37 = arith.constant 0 : index
      %73 = vector.load %arg11[%c0_36, %c0_37] : memref<8x128xf32, #tpu.memory_space<vmem>>, vector<8x128xf32>
      %74 = vector.broadcast %72 : vector<1x128xf32> to vector<8x128xf32>
      %75 = arith.addf %73, %74 : vector<8x128xf32>
      %c0_38 = arith.constant 0 : index
      %c0_39 = arith.constant 0 : index
      %76 = vector.load %arg9[%c0_38, %c0_39] : memref<8x128xf32, #tpu.memory_space<vmem>>, vector<8x128xf32>
      tpu.vector_store %arg9[%c0_38, %c0_39], %75 {strides = array<i32>} : memref<8x128xf32, #tpu.memory_space<vmem>>, vector<8x128xf32>,
      %77 = arith.mulf %69, %69 : vector<1x128xf32>
      %78 = math.log %69 : vector<1x128xf32>
      %cst_40 = arith.constant 2.000000e+00 : f32
      %79 = vector.broadcast %cst_40 : f32 to vector<1x128xf32>
      %80 = arith.mulf %79, %78 : vector<1x128xf32>
      %cst_41 = arith.constant 0.000000e+00 : f32
      %81 = vector.broadcast %cst_41 : f32 to vector<1x128xf32>
      %82 = arith.subf %81, %80 : vector<1x128xf32>
      %83 = arith.mulf %61, %61 : vector<1x128xf32>
      %84 = arith.addf %77, %83 : vector<1x128xf32>
      %cst_42 = arith.constant 1.000000e+00 : f32
      %85 = vector.broadcast %cst_42 : f32 to vector<1x128xf32>
      %86 = arith.mulf %84, %85 : vector<1x128xf32>
      %87 = arith.addf %82, %86 : vector<1x128xf32>
      %cst_43 = arith.constant 1.000000e+00 : f32
      %88 = vector.broadcast %cst_43 : f32 to vector<1x128xf32>
      %89 = arith.subf %87, %88 : vector<1x128xf32>
      %cst_44 = arith.constant 5.000000e-01 : f32
      %90 = vector.broadcast %cst_44 : f32 to vector<1x128xf32>
      %91 = arith.mulf %90, %89 : vector<1x128xf32>
      %92 = tpu.iota {dimensions = array<i32: 1>} : vector<1x128xi32>
      %c128_i32_45 = arith.constant 128 : i32
      %93 = arith.muli %arg0, %c128_i32_45 : i32
      %94 = vector.broadcast %93 : i32 to vector<1x128xi32>
      %95 = arith.addi %92, %94 : vector<1x128xi32>
      %c16_i32_46 = arith.constant 16 : i32
      %96 = vector.broadcast %c16_i32_46 : i32 to vector<1x128xi32>
      %97 = arith.cmpi slt, %95, %96 : vector<1x128xi32>
      %cst_47 = arith.constant 0.000000e+00 : f32
      %98 = vector.broadcast %cst_47 : f32 to vector<1x128xf32>
      %99 = arith.select %97, %91, %98 : vector<1x128xi1>, vector<1x128xf32>
      %c0_48 = arith.constant 0 : index
      %c0_49 = arith.constant 0 : index
      %100 = vector.load %arg12[%c0_48, %c0_49] : memref<1x1xf32, #tpu.memory_space<vmem>>, vector<1x1xf32>
      %101 = vector.shape_cast %99 : vector<1x128xf32> to vector<1x1x128xf32>
      %cst_50 = arith.constant dense<0.000000e+00> : vector<1xf32>
      %102 = vector.multi_reduction <add>, %101, %cst_50 [1, 2] : vector<1x1x128xf32> to vector<1xf32>
      %103 = vector.shape_cast %102 : vector<1xf32> to vector<1x1x1xf32>
      %104 = vector.extract %103[0, 0, 0] : f32 from vector<1x1x1xf32>
      %105 = vector.broadcast %104 : f32 to vector<1x1xf32>
      %106 = arith.addf %100, %105 : vector<1x1xf32>
      %107 = tpu.iota {dimensions = array<i32: 1>} : vector<1x128xi32>
      %c0_i32_51 = arith.constant 0 : i32
      %108 = vector.broadcast %c0_i32_51 : i32 to vector<1x128xi32>
      %109 = arith.cmpi eq, %107, %108 : vector<1x128xi32>
      %cst_52 = arith.constant 0.000000e+00 : f32
      %110 = vector.shape_cast %106 : vector<1x1xf32> to vector<1x1xf32>
      %111 = vector.broadcast %110 : vector<1x1xf32> to vector<1x128xf32>
      %112 = vector.broadcast %cst_52 : f32 to vector<1x128xf32>
      %113 = arith.select %109, %111, %112 : vector<1x128xi1>, vector<1x128xf32>
      %c0_53 = arith.constant 0 : index
      %c0_54 = arith.constant 0 : index
      %114 = vector.load %arg10[%c0_53, %c0_54] : memref<1x128xf32, #tpu.memory_space<vmem>>, vector<1x128xf32>
      tpu.vector_store %arg10[%c0_53, %c0_54], %113 {strides = array<i32>} : memref<1x128xf32, #tpu.memory_space<vmem>>, vector<1x128xf32>,
    } else {
    }
    return
  }
  func.func @transform_0(%arg0: i32, %arg1: i32) -> (i32, i32) {
    %c0_i32 = arith.constant 0 : i32
    %c0_i32_0 = arith.constant 0 : i32
    return %c0_i32, %arg1 : i32, i32
  }
  func.func @transform_1(%arg0: i32, %arg1: i32) -> (i32, i32) {
    %c0_i32 = arith.constant 0 : i32
    return %arg0, %arg1 : i32, i32
  }
  func.func @transform_2(%arg0: i32, %arg1: i32) -> (i32, i32) {
    %c0_i32 = arith.constant 0 : i32
    return %arg0, %arg1 : i32, i32
  }
  func.func @transform_3(%arg0: i32, %arg1: i32) -> (i32, i32) {
    %c0_i32 = arith.constant 0 : i32
    return %arg0, %arg1 : i32, i32
  }
  func.func @transform_4(%arg0: i32, %arg1: i32) -> (i32, i32) {
    %c0_i32 = arith.constant 0 : i32
    %c0_i32_0 = arith.constant 0 : i32
    return %c0_i32, %arg0 : i32, i32
  }
  func.func @transform_5(%arg0: i32, %arg1: i32) -> (i32, i32) {
    %c0_i32 = arith.constant 0 : i32
    %c0_i32_0 = arith.constant 0 : i32
    return %c0_i32, %arg0 : i32, i32
  }
  func.func @transform_6(%arg0: i32, %arg1: i32) -> (i32, i32) {
    %c0_i32 = arith.constant 0 : i32
    %c0_i32_0 = arith.constant 0 : i32
    return %c0_i32, %arg0 : i32, i32
  }
  func.func @transform_7(%arg0: i32, %arg1: i32) -> (i32, i32) {
    %c0_i32 = arith.constant 0 : i32
    %c0_i32_0 = arith.constant 0 : i32
    return %c0_i32, %arg0 : i32, i32
  }
  func.func @transform_8(%arg0: i32, %arg1: i32) -> (i32, i32) {
    %c0_i32 = arith.constant 0 : i32
    %c0_i32_0 = arith.constant 0 : i32
    return %c0_i32, %arg0 : i32, i32
  }
}

</mosaic_0001>

<bundles_post_ra>
// kernel: tpu_custom_call.1
= control target key start
LH: loop header
LB: loop body
LE: loop exit
PB: predicated region body
PF: predicated region fallthrough
CT: control target
= control target key end

     0   :  { %14 = vsyncpa [#allocation5], 0  ;;  %s1296_s0 = inlined_call_operand.hbm [shape: f32[8,128], index: 0, kind: input, shape index: {}]   ;;  %s1297_s1 = inlined_call_operand.hbm [shape: f32[128,128], index: 1, kind: input, shape index: {}]   ;;  %s1298_s2 = inlined_call_operand.hbm [shape: f32[128,128], index: 2, kind: input, shape index: {}]   ;;  %s1299_s3 = inlined_call_operand.hbm [shape: f32[128,128], index: 3, kind: input, shape index: {}]   ;;  %s1300_s4 = inlined_call_operand.vmem [shape: f32[1,128], index: 4, kind: input, shape index: {}]   ;;  %s1301_s5 = inlined_call_operand.vmem [shape: f32[1,128], index: 5, kind: input, shape index: {}]   ;;  %s1302_s6 = inlined_call_operand.vmem [shape: f32[1,128], index: 6, kind: input, shape index: {}]   ;;  %s1303_s7 = inlined_call_operand.hbm [shape: f32[8,128], index: 7, kind: output, shape index: {0}]   ;;  %s1304_s8 = inlined_call_operand.hbm [shape: f32[1,128], index: 8, kind: output, shape index: {1}]  }
   0x1   :  { %15 = vsyncpa [#allocation8], 0 }
   0x2   :  { %16 = vsyncpa [#allocation11], 0 }
   0x3   :  { %17 = vsyncpa [#allocation6], 0  ;;  %s34_s29 = sshll.u32 %s1297_s1, 4  ;;  %s35_s29 = int_to_ptr.hbm [resolvable:$true] %s34_s29 }
   0x4   :  { %18 = vsyncpa [#allocation14], 0  ;;  %s1064_s30 = smov [#allocation7]   ;;  %s24_s12 = sshll.u32 %s1296_s0, 4  ;;  %s25_s12 = int_to_ptr.hbm [resolvable:$true] %s24_s12 }
   0x5   :  { %s36_s9 = sshll.u32 %s1064_s30, 4  ;;  %s1065_s13 = smov 128   ;;  %s37_s9 = int_to_ptr.vmem [resolvable:$true] %s36_s9 }
   0x6   :  { %s1066_s14 = smov 8   ;;  %s1067_s15 = smov [#allocation4]  }
   0x7   :  { %42 = dma.hbm_to_vmem [thread:$0]  %s35_s29, 2048, %s37_s9, [#allocation8], %s1065_s13, %s1065_s13, %s1066_s14  }
   0x8   :  { %s26_s16 = sshll.u32 %s1067_s15, 4  ;;  %s47_s19 = sshll.u32 %s1298_s2, 4  ;;  %s27_s16 = int_to_ptr.vmem [resolvable:$true] %s26_s16  ;;  %s48_s19 = int_to_ptr.hbm [resolvable:$true] %s47_s19 }
   0x9   :  { %29 = dma.hbm_to_vmem [thread:$0]  %s25_s12, 128, %s27_s16, [#allocation5]  }
   0xa   :  { %s60_s21 = sshll.u32 %s1299_s3, 4  ;;  %s1068_s22 = smov [#allocation9]   ;;  %s61_s21 = int_to_ptr.hbm [resolvable:$true] %s60_s21 }
   0xb   :  { %s49_s23 = sshll.u32 %s1068_s22, 4  ;;  %s1069_s0 = smov [#allocation10]   ;;  %s50_s23 = int_to_ptr.vmem [resolvable:$true] %s49_s23 }
   0xc   :  { %55 = dma.hbm_to_vmem [thread:$0]  %s48_s19, 2048, %s50_s23, [#allocation8], %s1065_s13, %s1065_s13, %s1066_s14  }
   0xd   :  { %s62_s24 = sshll.u32 %s1069_s0, 4  ;;  %s63_s24 = int_to_ptr.vmem [resolvable:$true] %s62_s24 }
   0xe   :  { %68 = dma.hbm_to_vmem [thread:$0]  %s61_s21, 2048, %s63_s24, [#allocation11], %s1065_s13, %s1065_s13, %s1066_s14  }
   0xf   :  { %1054 = dma.done.wait [#allocation5], 128  }
  0x10   :  { %1055 = vsyncadd [#allocation5], 4294967168 }
  0x11   :  { %1056 = dma.done.wait [#allocation8], 4096  }
  0x12   :  { %1057 = vsyncadd [#allocation8], 4294963200 }
  0x13   :  { %1058 = dma.done.wait [#allocation11], 2048  }
  0x14   :  { %1059 = vsyncadd [#allocation11], 4294965248  ;;  %v114_v0 = vld [vmem:[#allocation9] sm:$0xff]  ;;  %v115_v1 = vld [vmem:[#allocation9 + $0x8] sm:$0xff]  ;;  %v637_v54 = vlaneseq  ;;  %vm746_vm8 = vcmask 1040384   ;;  %s1072_s29 = smov [#allocation12]  }
  0x15   :  { %v146_v2 = vmin.f32 %v114_v0, 20.0  ;;  %v708_v3 = vld [vmem:[%s1301_s5] sm:$0x1]  ;;  %v147_v4 = vmin.f32 %v115_v1, 20.0  ;;  %vm130_vm1 = vcmp.gt.f32.partialorder %v114_v0, 20.0  ;;  %vm131_vm3 = vcmp.gt.f32.partialorder %v115_v1, 20.0 }
  0x16   :  { %v710_v5 = vmin.f32 %v708_v3, 20.0  ;;  %vm709_vm5 = vcmp.gt.f32.partialorder %v708_v3, 20.0  ;;  %v1148_v40 = vld [vmem:[#allocation7] sm:$0xff]  ;;  %v1151_v41 = vld [vmem:[#allocation7 + $0x8] sm:$0xff]  ;;  %v1156_v42 = vld [vmem:[%s1300_s4] sm:$0x1] }
  0x17   :  { %v162_v6 = vmul.f32 1.442695, %v146_v2  ;;  %v164_v7 = vmul.f32 1.442695, %v147_v4  ;;  %v506_v44 = vmul.f32 %v1148_v40, %v1148_v40  ;;  %v507_v47 = vmul.f32 %v1151_v41, %v1151_v41  ;;  %s773_s30 = sshll.u32 %s1072_s29, 4  ;;  %s775_s11 = sshll.u32 %s1303_s7, 4  ;;  %s774_s30 = int_to_ptr.vmem [resolvable:$true] %s773_s30  ;;  %s776_s11 = int_to_ptr.hbm [resolvable:$true] %s775_s11 }
  0x18   :  { %v711_v8 = vmul.f32 1.442695, %v710_v5  ;;  %v737_v51 = vmul.f32 %v1156_v42, %v1156_v42  ;;  %s1073_s12 = smov [#allocation13]   ;;  %s786_s15 = sshll.u32 %s1304_s8, 4  ;;  %s787_s15 = int_to_ptr.hbm [resolvable:$true] %s786_s15 }
  0x19   :  { %836 = vpow2.f32 %v162_v6  ;;  %s784_s13 = sshll.u32 %s1073_s12, 4  ;;  %s785_s13 = int_to_ptr.vmem [resolvable:$true] %s784_s13 }
  0x1a   :  { %838 = vpow2.f32 %v164_v7 }
  0x1b   :  { %840 = vpow2.f32 %v711_v8 }
  0x1f   :  { %v837_v9 = vpop.eup %836 }
  0x20   :  { %v839_v10 = vpop.eup %838  ;;  %v194_v11 = vadd.f32 1.0, %v837_v9  ;;  %v197_v12 = vmul.f32 -0.5, %v837_v9  ;;  %v200_v19 = vand.u32 2147483647, %v837_v9 }
  0x21   :  { %v841_v13 = vpop.eup %840  ;;  %v203_v14 = vadd.f32 1.0, %v839_v10  ;;  %v206_v15 = vmul.f32 -0.5, %v839_v10  ;;  %v209_v21 = vand.u32 2147483647, %v839_v10 }
  0x22   :  { %842 = vlog2.f32 %v194_v11  ;;  %v713_v16 = vadd.f32 1.0, %v841_v13  ;;  %v198_v17 = vadd.f32 1.0, %v197_v12  ;;  %v716_v18 = vmul.f32 -0.5, %v841_v13 }
  0x23   :  { %844 = vlog2.f32 %v203_v14  ;;  %v207_v20 = vadd.f32 1.0, %v206_v15  ;;  %v719_v23 = vand.u32 2147483647, %v841_v13  ;;  %vm1134_vm0 = vcmp.lt.f32.partialorder %v200_v19, 0.0004427343  ;;  %v128_v19 = vld [vmem:[#allocation9 + $0x70] sm:$0xff] }
  0x24   :  { %846 = vlog2.f32 %v713_v16  ;;  %v717_v22 = vadd.f32 1.0, %v716_v18  ;;  %v199_v24 = vmul.f32 %v837_v9, %v198_v17  ;;  %vm210_vm2 = vcmp.lt.f32.partialorder %v209_v21, 0.0004427343  ;;  %v129_v16 = vld [vmem:[#allocation9 + $0x78] sm:$0xff] }
  0x25   :  { %v208_v27 = vmul.f32 %v839_v10, %v207_v20  ;;  %vm720_vm4 = vcmp.lt.f32.partialorder %v719_v23, 0.0004427343  ;;  %v161_v17 = vmin.f32 %v129_v16, 20.0  ;;  %v160_v20 = vmin.f32 %v128_v19, 20.0 }
  0x26   :  { %v718_v30 = vmul.f32 %v841_v13, %v717_v22  ;;  %v1174_v22 = vld [vmem:[#allocation9 + $0x68] sm:$0xff]  ;;  %vm145_vm10 = vcmp.gt.f32.partialorder %v129_v16, 20.0  ;;  %vm144_vm12 = vcmp.gt.f32.partialorder %v128_v19, 20.0 }
  0x27   :  { %v192_v18 = vmul.f32 1.442695, %v161_v17  ;;  %v190_v21 = vmul.f32 1.442695, %v160_v20  ;;  %v159_v23 = vmin.f32 %v1174_v22, 20.0  ;;  %v112_v20 = vld [vmem:[#allocation7 + $0x70] sm:$0xff] }
  0x28   :  { %v843_v25 = vpop.eup %842  ;;  %vm143_vm14 = vcmp.gt.f32.partialorder %v1174_v22, 20.0 }
  0x29   :  { %v845_v28 = vpop.eup %844  ;;  %v196_v29 = vmul.f32 0.6931472, %v843_v25  ;;  %v188_v25 = vmul.f32 1.442695, %v159_v23 }
  0x2a   :  { %v847_v31 = vpop.eup %846  ;;  %v205_v32 = vmul.f32 0.6931472, %v845_v28 }
  0x2b   :  { %v202_v33 = vsel %vm1134_vm0, %v199_v24, %v196_v29  ;;  %v715_v34 = vmul.f32 0.6931472, %v847_v31 }
  0x2c   :  { %v211_v35 = vsel %vm210_vm2, %v208_v27, %v205_v32  ;;  %v1140_v36 = vsel %vm130_vm1, %v114_v0, %v202_v33  ;;  %v1170_v0 = vand.u32 127, %v637_v54  ;;  %v1177_v27 = vld [vmem:[#allocation9 + $0x60] sm:$0xff]  ;;  %v1180_v32 = vld [vmem:[#allocation9 + $0x58] sm:$0xff] }
  0x2d   :  { %v1142_v37 = vsel %vm131_vm3, %v115_v1, %v211_v35  ;;  %848 = vlog2.f32 %v1140_v36  ;;  %v721_v38 = vsel %vm720_vm4, %v718_v30, %v715_v34  ;;  %v426_v43 = vmul.f32 %v1140_v36, %v1140_v36 }
  0x2e   :  { %850 = vlog2.f32 %v1142_v37  ;;  %v1146_v39 = vsel %vm709_vm5, %v708_v3, %v721_v38  ;;  %v427_v46 = vmul.f32 %v1142_v37, %v1142_v37  ;;  %vm642_vm6 = vcmp.lt.s32.totalorder %v1170_v0, 32 }
  0x2f   :  { %852 = vlog2.f32 %v1146_v39  ;;  %v732_v50 = vmul.f32 %v1146_v39, %v1146_v39  ;;  %v522_v56 = vadd.f32 %v506_v44, %v426_v43  ;;  %vm743_vm7 = vcmp.lt.s32.totalorder %v1170_v0, 16 }
  0x30   :  { %v523_v59 = vadd.f32 %v507_v47, %v427_v46  ;;  %854 = vpow2.f32 %v192_v18  ;;  %v158_v28 = vmin.f32 %v1177_v27, 20.0  ;;  %v157_v34 = vmin.f32 %v1180_v32, 20.0  ;;  %v1183_v47 = vld [vmem:[#allocation9 + $0x50] sm:$0xff] }
  0x31   :  { %v738_v62 = vadd.f32 %v737_v51, %v732_v50  ;;  %856 = vpow2.f32 %v190_v21  ;;  %v156_v51 = vmin.f32 %v1183_v47, 20.0  ;;  %vm142_vm0 = vcmp.gt.f32.partialorder %v1177_v27, 20.0 }
  0x32   :  { %858 = vpow2.f32 %v188_v25  ;;  %v186_v30 = vmul.f32 1.442695, %v158_v28  ;;  %v184_v43 = vmul.f32 1.442695, %v157_v34  ;;  %vm141_vm2 = vcmp.gt.f32.partialorder %v1180_v32, 20.0 }
  0x33   :  { %v849_v45 = vpop.eup %848  ;;  %vm140_vm4 = vcmp.gt.f32.partialorder %v1183_v47, 20.0 }
  0x34   :  { %v851_v48 = vpop.eup %850  ;;  %v443_v49 = vmul.f32 0.6931472, %v849_v45 }
  0x35   :  { %v853_v52 = vpop.eup %852  ;;  %v445_v53 = vmul.f32 0.6931472, %v851_v48 }
  0x36   :  { %v474_v55 = vmul.f32 2.0, %v443_v49  ;;  %v734_v57 = vmul.f32 0.6931472, %v853_v52  ;;  %v855_v24 = vpop.eup %854 }
  0x37   :  { %v475_v58 = vmul.f32 2.0, %v445_v53  ;;  %v329_v26 = vadd.f32 1.0, %v855_v24  ;;  %v857_v29 = vpop.eup %856  ;;  %v332_v33 = vmul.f32 -0.5, %v855_v24  ;;  %v335_v45 = vand.u32 2147483647, %v855_v24 }
  0x38   :  { %v490_v60 = vsub.f32 0.0, %v474_v55  ;;  %v735_v61 = vmul.f32 2.0, %v734_v57  ;;  %v320_v31 = vadd.f32 1.0, %v857_v29  ;;  %v859_v35 = vpop.eup %858  ;;  %v323_v50 = vmul.f32 -0.5, %v857_v29  ;;  %v369_v57 = vld [vmem:[#allocation10 + $0x78] sm:$0xff] }
  0x39   :  { %v491_v63 = vsub.f32 0.0, %v475_v58  ;;  %860 = vlog2.f32 %v329_v26  ;;  %v333_v38 = vadd.f32 1.0, %v332_v33  ;;  %v311_v46 = vadd.f32 1.0, %v859_v35  ;;  %v1194_v33 = vld [vmem:[#allocation9 + $0x38] sm:$0xff] }
  0x3a   :  { %v538_v1 = vadd.f32 %v522_v56, %v490_v60  ;;  %v736_v2 = vsub.f32 0.0, %v735_v61  ;;  %862 = vpow2.f32 %v186_v30  ;;  %vm336_vm9 = vcmp.lt.f32.partialorder %v335_v45, 0.0004427343  ;;  %v111_v45 = vld [vmem:[#allocation7 + $0x68] sm:$0xff] }
  0x3b   :  { %v539_v3 = vadd.f32 %v523_v59, %v491_v63  ;;  %864 = vlog2.f32 %v320_v31  ;;  %v334_v49 = vmul.f32 %v855_v24, %v333_v38  ;;  %v324_v54 = vadd.f32 1.0, %v323_v50 }
  0x3c   :  { %v803_v4 = vadd.f32 -1.0, %v538_v1  ;;  %v739_v5 = vadd.f32 %v738_v62, %v736_v2  ;;  %866 = vpow2.f32 %v184_v43  ;;  %v326_v58 = vand.u32 2147483647, %v857_v29  ;;  %v1186_v2 = vld [vmem:[#allocation9 + $0x48] sm:$0xff] }
  0x3d   :  { %v804_v6 = vadd.f32 -1.0, %v539_v3  ;;  %868 = vlog2.f32 %v311_v46  ;;  %v182_v60 = vmul.f32 1.442695, %v156_v51  ;;  %v325_v63 = vmul.f32 %v857_v29, %v324_v54  ;;  %v113_v3 = vld [vmem:[#allocation7 + $0x78] sm:$0xff]  ;;  %v367_v29 = vld [vmem:[#allocation10 + $0x68] sm:$0xff] }
  0x3e   :  { %v570_v7 = vmul.f32 0.5, %v803_v4  ;;  %v819_v8 = vadd.f32 -1.0, %v739_v5  ;;  %v314_v1 = vmul.f32 -0.5, %v859_v35  ;;  %vm327_vm11 = vcmp.lt.f32.partialorder %v326_v58, 0.0004427343 }
  0x3f   :  { %v571_v9 = vmul.f32 0.5, %v804_v6  ;;  %v861_v44 = vpop.eup %860  ;;  %v155_v4 = vmin.f32 %v1186_v2, 20.0  ;;  %v153_v46 = vmin.f32 %v1194_v33, 20.0 }
  0x40   :  { %v659_v10 = vsel %vm642_vm6, %v570_v7, 0.0  ;;  %v741_v13 = vmul.f32 0.5, %v819_v8  ;;  %v331_v48 = vmul.f32 0.6931472, %v861_v44  ;;  %v863_v52 = vpop.eup %862  ;;  %v315_v8 = vadd.f32 1.0, %v314_v1 }
  0x41   :  { %v660_v11 = vsel %vm642_vm6, %v571_v9, 0.0  ;;  %v865_v55 = vpop.eup %864  ;;  %v302_v59 = vadd.f32 1.0, %v863_v52  ;;  %v305_v18 = vmul.f32 -0.5, %v863_v52  ;;  %v180_v21 = vmul.f32 1.442695, %v155_v4 }
  0x42   :  { %v676_v12 = vadd.f32 %v660_v11, %v659_v10  ;;  %v744_v14 = vsel %vm743_vm7, %v741_v13, 0.0  ;;  %v337_v53 = vsel %vm336_vm9, %v334_v49, %v331_v48  ;;  %v322_v62 = vmul.f32 0.6931472, %v865_v55  ;;  %v867_v5 = vpop.eup %866  ;;  %v368_v11 = vld [vmem:[#allocation10 + $0x70] sm:$0xff] }
  0x43   :  { %v747_v15 = vsel %vm746_vm8, %v744_v14, 0.0  ;;  %v353_v56 = vsel %vm145_vm10, %v129_v16, %v337_v53  ;;  %870 = vlog2.f32 %v302_v59  ;;  %v869_v9 = vpop.eup %868  ;;  %v293_v13 = vadd.f32 1.0, %v867_v5  ;;  %v1189_v14 = vld [vmem:[#allocation9 + $0x40] sm:$0xff] }
  0x44   :  { %691 = vadd.xlane.f32.xlu0 %v676_v12  ;;  %v385_v61 = vmul.f32 %v369_v57, %v353_v56  ;;  %v328_v7 = vsel %vm327_vm11, %v325_v63, %v322_v62  ;;  %v317_v12 = vand.u32 2147483647, %v859_v35  ;;  %872 = vpow2.f32 %v182_v60  ;;  %v366_v53 = vld [vmem:[#allocation10 + $0x60] sm:$0xff]  ;;  %v1199_v60 = vld [vmem:[#allocation9 + $0x30] sm:$0xff] }
  0x45   :  { %v352_v10 = vsel %vm144_vm12, %v128_v19, %v328_v7  ;;  %v313_v16 = vmul.f32 0.6931472, %v869_v9  ;;  %v316_v17 = vmul.f32 %v859_v35, %v315_v8  ;;  %874 = vlog2.f32 %v293_v13  ;;  %v110_v62 = vld [vmem:[#allocation7 + $0x60] sm:$0xff]  ;;  %v365_v7 = vld [vmem:[#allocation10 + $0x58] sm:$0xff]  ;;  %v1204_v9 = vld [vmem:[#allocation9 + $0x28] sm:$0xff] }
  0x46   :  { %v401_v6 = vadd.f32 %v385_v61, %v113_v3  ;;  %vm318_vm13 = vcmp.lt.f32.partialorder %v317_v12, 0.0004427343  ;;  %v154_v23 = vmin.f32 %v1189_v14, 20.0  ;;  %v306_v25 = vadd.f32 1.0, %v305_v18 }
  0x47   :  { %v319_v19 = vsel %vm318_vm13, %v316_v17, %v313_v16  ;;  %v308_v30 = vand.u32 2147483647, %v863_v52  ;;  %876 = vpow2.f32 %v180_v21  ;;  %v296_v43 = vmul.f32 -0.5, %v867_v5 }
  0x48   :  { %404 = vmatpush.xpose.msra.mxu0 %v401_v6  ;;  %v351_v28 = vsel %vm143_vm14, %v1174_v22, %v319_v19  ;;  %v178_v31 = vmul.f32 1.442695, %v154_v23  ;;  %v307_v38 = vmul.f32 %v863_v52, %v306_v25  ;;  %v299_v54 = vand.u32 2147483647, %v867_v5 }
  0x49   :  { %v871_v26 = vpop.eup %870  ;;  %v383_v34 = vmul.f32 %v367_v29, %v351_v28  ;;  %vm309_vm15 = vcmp.lt.f32.partialorder %v308_v30, 0.0004427343  ;;  %v297_v49 = vadd.f32 1.0, %v296_v43  ;;  %v176_v56 = vmul.f32 1.442695, %v153_v46  ;;  %v364_v28 = vld [vmem:[#allocation10 + $0x50] sm:$0xff] }
  0x4a   :  { %v304_v35 = vmul.f32 0.6931472, %v871_v26  ;;  %v873_v44 = vpop.eup %872  ;;  %878 = vpow2.f32 %v178_v31  ;;  %vm300_vm1 = vcmp.lt.f32.partialorder %v299_v54, 0.0004427343  ;;  %v152_v63 = vmin.f32 %v1199_v60, 20.0  ;;  %v363_v54 = vld [vmem:[#allocation10 + $0x48] sm:$0xff] }
  0x4b   :  { %v399_v48 = vadd.f32 %v383_v34, %v111_v45  ;;  %v875_v50 = vpop.eup %874  ;;  %v284_v55 = vadd.f32 1.0, %v873_v44  ;;  %v298_v58 = vmul.f32 %v867_v5, %v297_v49  ;;  %v287_v59 = vmul.f32 -0.5, %v873_v44 }
  0x4c   :  { %748 = vadd.xlane.f32.xlu0 %v747_v15  ;;  %v384_v15 = vmul.f32 %v368_v11, %v352_v10  ;;  %v310_v22 = vsel %vm309_vm15, %v307_v38, %v304_v35  ;;  %v295_v57 = vmul.f32 0.6931472, %v875_v50  ;;  %v290_v8 = vand.u32 2147483647, %v873_v44  ;;  %v109_v10 = vld [vmem:[#allocation7 + $0x58] sm:$0xff]  ;;  %v108_v38 = vld [vmem:[#allocation7 + $0x50] sm:$0xff] }
  0x4d   :  { %v350_v51 = vsel %vm142_vm0, %v1177_v27, %v310_v22  ;;  %v877_v61 = vpop.eup %876  ;;  %880 = vlog2.f32 %v284_v55  ;;  %v288_v3 = vadd.f32 1.0, %v287_v59  ;;  %v151_v16 = vmin.f32 %v1204_v9, 20.0  ;;  %v107_v59 = vld [vmem:[#allocation7 + $0x48] sm:$0xff] }
  0x4e   :  { %v400_v24 = vadd.f32 %v384_v15, %v112_v20  ;;  %v382_v52 = vmul.f32 %v366_v53, %v350_v51  ;;  %v301_v27 = vsel %vm300_vm1, %v298_v58, %v295_v57  ;;  %v275_v5 = vadd.f32 1.0, %v877_v61  ;;  %v1220_v51 = vld [vmem:[#allocation9 + $0x20] sm:$0xff] }
  0x4f   :  { %v349_v6 = vsel %vm141_vm2, %v1180_v32, %v301_v27  ;;  %882 = vpow2.f32 %v176_v56  ;;  %v278_v12 = vmul.f32 -0.5, %v877_v61  ;;  %v174_v15 = vmul.f32 1.442695, %v152_v63 }
  0x50   :  { %405 = vmatpush.xpose.msra.mxu0 %v400_v24  ;;  %v398_v1 = vadd.f32 %v382_v52, %v110_v62  ;;  %v879_v4 = vpop.eup %878  ;;  %v381_v11 = vmul.f32 %v365_v7, %v349_v6  ;;  %884 = vlog2.f32 %v275_v5  ;;  %v289_v18 = vmul.f32 %v873_v44, %v288_v3  ;;  %v362_v52 = vld [vmem:[#allocation10 + $0x40] sm:$0xff] }
  0x51   :  { %v266_v13 = vadd.f32 1.0, %v879_v4  ;;  %v279_v20 = vadd.f32 1.0, %v278_v12  ;;  %vm1207_vm3 = vcmp.lt.f32.partialorder %v290_v8, 0.0004427343  ;;  %v281_v23 = vand.u32 2147483647, %v877_v61 }
  0x52   :  { %v397_v17 = vadd.f32 %v381_v11, %v109_v10  ;;  %v172_v24 = vmul.f32 1.442695, %v151_v16  ;;  %v269_v25 = vmul.f32 -0.5, %v879_v4  ;;  %vm139_vm6 = vcmp.gt.f32.partialorder %v1186_v2, 20.0  ;;  %v106_v7 = vld [vmem:[#allocation7 + $0x40] sm:$0xff] }
  0x53   :  { %886 = vlog2.f32 %v266_v13  ;;  %v881_v32 = vpop.eup %880  ;;  %v280_v30 = vmul.f32 %v877_v61, %v279_v20  ;;  %vm1214_vm5 = vcmp.lt.f32.partialorder %v281_v23, 0.0004427343  ;;  %v272_v44 = vand.u32 2147483647, %v879_v4  ;;  %v361_v20 = vld [vmem:[#allocation10 + $0x38] sm:$0xff] }
  0x54   :  { %406 = vmatpush.xpose.msra.mxu0 %v399_v48  ;;  %888 = vpow2.f32 %v174_v15  ;;  %v286_v19 = vmul.f32 0.6931472, %v881_v32  ;;  %v270_v34 = vadd.f32 1.0, %v269_v25  ;;  %vm138_vm7 = vcmp.gt.f32.partialorder %v1189_v14, 20.0  ;;  %v1232_v15 = vld [vmem:[#allocation9 + $0x18] sm:$0xff]  ;;  %v1239_v32 = vld [vmem:[#allocation9 + $0x10] sm:$0xff] }
  0x55   :  { %v883_v26 = vpop.eup %882  ;;  %890 = vpow2.f32 %v172_v24  ;;  %vm273_vm8 = vcmp.lt.f32.partialorder %v272_v44, 0.0004427343  ;;  %v150_v6 = vmin.f32 %v1220_v51, 20.0  ;;  %vm137_vm10 = vcmp.gt.f32.partialorder %v1194_v33, 20.0 }
  0x56   :  { %v292_v29 = vsel %vm1207_vm3, %v289_v18, %v286_v19  ;;  %v885_v35 = vpop.eup %884  ;;  %v257_v45 = vadd.f32 1.0, %v883_v26  ;;  %v271_v49 = vmul.f32 %v879_v4, %v270_v34  ;;  %v260_v50 = vmul.f32 -0.5, %v883_v26  ;;  %v105_v34 = vld [vmem:[#allocation7 + $0x38] sm:$0xff] }
  0x57   :  { %v348_v43 = vsel %vm140_vm4, %v1183_v47, %v292_v29  ;;  %v277_v22 = vmul.f32 0.6931472, %v885_v35  ;;  %v263_v63 = vand.u32 2147483647, %v883_v26  ;;  %v170_v19 = vmul.f32 1.442695, %v150_v6 }
  0x58   :  { %407 = vmatpush.xpose.msra.mxu0 %v398_v1  ;;  %v380_v48 = vmul.f32 %v364_v28, %v348_v43  ;;  %892 = vlog2.f32 %v257_v45  ;;  %v261_v57 = vadd.f32 1.0, %v260_v50  ;;  %v149_v25 = vmin.f32 %v1232_v15, 20.0 }
  0x59   :  { %v887_v46 = vpop.eup %886  ;;  %v283_v47 = vsel %vm1214_vm5, %v280_v30, %v277_v22  ;;  %vm1234_vm9 = vcmp.lt.f32.partialorder %v263_v63, 0.0004427343  ;;  %v148_v43 = vmin.f32 %v1239_v32, 20.0  ;;  %vm136_vm12 = vcmp.gt.f32.partialorder %v1199_v60, 20.0 }
  0x5a   :  { %v889_v53 = vpop.eup %888  ;;  %v268_v55 = vmul.f32 0.6931472, %v887_v46  ;;  %v396_v56 = vadd.f32 %v380_v48, %v108_v38  ;;  %v347_v61 = vsel %vm139_vm6, %v1186_v2, %v283_v47  ;;  %v262_v5 = vmul.f32 %v883_v26, %v261_v57  ;;  %v360_v48 = vld [vmem:[#allocation10 + $0x30] sm:$0xff] }
  0x5b   :  { %v891_v58 = vpop.eup %890  ;;  %v248_v1 = vadd.f32 1.0, %v889_v53  ;;  %v379_v27 = vmul.f32 %v363_v54, %v347_v61  ;;  %v251_v4 = vmul.f32 -0.5, %v889_v53  ;;  %v254_v10 = vand.u32 2147483647, %v889_v53 }
  0x5c   :  { %408 = vmatpush.xpose.msra.mxu0 %v397_v17  ;;  %v274_v62 = vsel %vm273_vm8, %v271_v49, %v268_v55  ;;  %v239_v2 = vadd.f32 1.0, %v891_v58  ;;  %v242_v13 = vmul.f32 -0.5, %v891_v58  ;;  %v245_v30 = vand.u32 2147483647, %v891_v58 }
  0x5d   :  { %v346_v3 = vsel %vm138_vm7, %v1189_v14, %v274_v62  ;;  %894 = vlog2.f32 %v248_v1  ;;  %v395_v11 = vadd.f32 %v379_v27, %v107_v59  ;;  %v252_v12 = vadd.f32 1.0, %v251_v4  ;;  %v359_v59 = vld [vmem:[#allocation10 + $0x28] sm:$0xff] }
  0x5e   :  { %v378_v8 = vmul.f32 %v362_v52, %v346_v3  ;;  %v893_v16 = vpop.eup %892  ;;  %896 = vlog2.f32 %v239_v2  ;;  %vm1241_vm11 = vcmp.lt.f32.partialorder %v254_v10, 0.0004427343  ;;  %v243_v24 = vadd.f32 1.0, %v242_v13  ;;  %v103_v4 = vld [vmem:[#allocation7 + $0x28] sm:$0xff] }
  0x5f   :  { %v259_v18 = vmul.f32 0.6931472, %v893_v16  ;;  %v253_v29 = vmul.f32 %v889_v53, %v252_v12  ;;  %898 = vpow2.f32 %v170_v19  ;;  %v168_v38 = vmul.f32 1.442695, %v149_v25 }
  0x60   :  { %409 = vmatpush.xpose.msra.mxu0 %v396_v56  ;;  %v394_v14 = vadd.f32 %v378_v8, %v106_v7  ;;  %v244_v22 = vmul.f32 %v891_v58, %v243_v24  ;;  %v166_v49 = vmul.f32 1.442695, %v148_v43  ;;  %vm1255_vm13 = vcmp.lt.f32.partialorder %v245_v30, 0.0004427343  ;;  %v104_v56 = vld [vmem:[#allocation7 + $0x30] sm:$0xff] }
  0x61   :  { %v265_v28 = vsel %vm1234_vm9, %v262_v5, %v259_v18  ;;  %900 = vpow2.f32 %v168_v38  ;;  %vm135_vm14 = vcmp.gt.f32.partialorder %v1204_v9, 20.0  ;;  %vm96_vm15 = vcmask 0  }
  0x62   :  { %v345_v35 = vsel %vm137_vm10, %v1194_v33, %v265_v28  ;;  %902 = vpow2.f32 %v166_v49  ;;  %v1070_v1 = vmov 0.0   ;;  %vm134_vm1 = vcmp.gt.f32.partialorder %v1220_v51, 20.0 }
  0x63   :  { %v895_v31 = vpop.eup %894  ;;  %v377_v45 = vmul.f32 %v361_v20, %v345_v35  ;;  %97 = vst.msk [vmem:[#allocation3] sm:$0x1] %vm96_vm15, %v1070_v1  ;;  %vm133_vm3 = vcmp.gt.f32.partialorder %v1232_v15, 20.0  ;;  %vm132_vm5 = vcmp.gt.f32.partialorder %v1239_v32, 20.0  ;;  %v100_v1 = vld [vmem:[#allocation7 + $0x10] sm:$0xff]  ;;  %vm759_vm6 = vcmp.eq.s32.totalorder %v1170_v0, 0 }
  0x64   :  { %410 = vmatpush.xpose.msra.mxu0 %v395_v11  ;;  %v250_v46 = vmul.f32 0.6931472, %v895_v31  ;;  %v897_v50 = vpop.eup %896 }
  0x65   :  { %v393_v54 = vadd.f32 %v377_v45, %v105_v34  ;;  %v241_v52 = vmul.f32 0.6931472, %v897_v50  ;;  %v899_v61 = vpop.eup %898  ;;  %v102_v50 = vld [vmem:[#allocation7 + $0x20] sm:$0xff] }
  0x66   :  { %v256_v33 = vsel %vm1241_vm11, %v253_v29, %v250_v46  ;;  %v230_v5 = vadd.f32 1.0, %v899_v61  ;;  %v233_v10 = vmul.f32 -0.5, %v899_v61  ;;  %v236_v20 = vand.u32 2147483647, %v899_v61 }
  0x67   :  { %v344_v47 = vsel %vm136_vm12, %v1199_v60, %v256_v33  ;;  %v247_v63 = vsel %vm1255_vm13, %v244_v22, %v241_v52  ;;  %v901_v7 = vpop.eup %900 }
  0x68   :  { %411 = vmatpush.xpose.msra.mxu0 %v394_v14  ;;  %v376_v58 = vmul.f32 %v360_v48, %v344_v47  ;;  %v343_v6 = vsel %vm135_vm14, %v1204_v9, %v247_v63  ;;  %v221_v2 = vadd.f32 1.0, %v901_v7  ;;  %v224_v13 = vmul.f32 -0.5, %v901_v7  ;;  %v903_v16 = vpop.eup %902  ;;  %v357_v48 = vld [vmem:[#allocation10 + $0x18] sm:$0xff] }
  0x69   :  { %v375_v8 = vmul.f32 %v359_v59, %v343_v6  ;;  %904 = vlog2.f32 %v230_v5  ;;  %v234_v18 = vadd.f32 1.0, %v233_v10  ;;  %v212_v23 = vadd.f32 1.0, %v903_v16  ;;  %v101_v47 = vld [vmem:[#allocation7 + $0x18] sm:$0xff] }
  0x6a   :  { %v392_v60 = vadd.f32 %v376_v58, %v104_v56  ;;  %906 = vlog2.f32 %v221_v2  ;;  %v215_v9 = vmul.f32 -0.5, %v903_v16  ;;  %v227_v19 = vand.u32 2147483647, %v901_v7 }
  0x6b   :  { %v391_v17 = vadd.f32 %v375_v8, %v103_v4  ;;  %908 = vlog2.f32 %v212_v23  ;;  %vm1267_vm0 = vcmp.lt.f32.partialorder %v236_v20, 0.0004427343  ;;  %v218_v34 = vand.u32 2147483647, %v903_v16  ;;  %v675_v8 = vld [vmem:[#allocation3] sm:$0x1] }
  0x6c   :  { %412 = vmatpush.xpose.msra.mxu0 %v393_v54  ;;  %v216_v28 = vadd.f32 1.0, %v215_v9  ;;  %vm228_vm2 = vcmp.lt.f32.partialorder %v227_v19, 0.0004427343 }
  0x6d   :  { %vm219_vm4 = vcmp.lt.f32.partialorder %v218_v34, 0.0004427343 }
  0x6e   :  { %v217_v22 = vmul.f32 %v903_v16, %v216_v28 }
  0x6f   :  { %v905_v29 = vpop.eup %904 }
  0x70   :  { %413 = vmatpush.xpose.msra.mxu0 %v392_v60  ;;  %v907_v35 = vpop.eup %906  ;;  %v232_v43 = vmul.f32 0.6931472, %v905_v29 }
  0x71   :  { %v223_v45 = vmul.f32 0.6931472, %v907_v35  ;;  %v909_v49 = vpop.eup %908 }
  0x72   :  { %v214_v56 = vmul.f32 0.6931472, %v909_v49 }
  0x74   :  { %414 = vmatpush.xpose.msra.mxu0 %v391_v17  ;;  %v220_v59 = vsel %vm219_vm4, %v217_v22, %v214_v56 }
  0xb7   :  { %v692_v21 = vpop.xlane.xlu0 %691 }
  0xb8   :  { %v693_v26 = vrot.slane %v692_v21, 4 }
  0xba   :  { %v694_v44 = vadd.f32 %v693_v26, %v692_v21  ;;  %v225_v21 = vadd.f32 1.0, %v224_v13  ;;  %v235_v26 = vmul.f32 %v899_v61, %v234_v18  ;;  %v340_v61 = vsel %vm132_vm5, %v1239_v32, %v220_v59  ;;  %v403_v32 = vld [vmem:[#allocation4] sm:$0xff] }
  0xbc   :  { %v695_v53 = vrot.slane %v694_v44, 2  ;;  %v226_v31 = vmul.f32 %v901_v7, %v225_v21  ;;  %v238_v46 = vsel %vm1267_vm0, %v235_v26, %v232_v43  ;;  %v1071_v7 = vmov 0  }
  0xbd   :  { %834 = vset.pattern.permute.xlu1 %v1071_v7  ;;  %835 = vset.pattern.permute.xlu0 %v1071_v7 }
  0xbe   :  { %v696_v57 = vadd.f32 %v695_v53, %v694_v44  ;;  %v358_v44 = vld [vmem:[#allocation10 + $0x20] sm:$0xff]  ;;  %v342_v53 = vsel %vm134_vm1, %v1220_v51, %v238_v46  ;;  %v229_v54 = vsel %vm228_vm2, %v226_v31, %v223_v45  ;;  %v355_v51 = vld [vmem:[#allocation10 + $0x8] sm:$0xff] }
  0xbf   :  { %v749_v62 = vpop.xlane.xlu0 %748  ;;  %v374_v33 = vmul.f32 %v358_v44, %v342_v53  ;;  %v341_v55 = vsel %vm133_vm3, %v1232_v15, %v229_v54  ;;  %v354_v15 = vld [vmem:[#allocation10] sm:$0xff] }
  0xc0   :  { %v750_v27 = vrot.slane %v749_v62, 4  ;;  %v697_v3 = vrot.slane %v696_v57, 1  ;;  %v373_v52 = vmul.f32 %v357_v48, %v341_v55  ;;  %v370_v4 = vmul.f32 %v354_v15, %v1140_v36  ;;  %v723_v36 = vld [vmem:[%s1302_s6] sm:$0x1] }
  0xc1   :  { %v390_v58 = vadd.f32 %v374_v33, %v102_v50 }
  0xc2   :  { %v751_v11 = vadd.f32 %v750_v27, %v749_v62  ;;  %v698_v12 = vadd.f32 %v697_v3, %v696_v57  ;;  %v356_v57 = vld [vmem:[#allocation10 + $0x10] sm:$0xff]  ;;  %v389_v62 = vadd.f32 %v373_v52, %v101_v47  ;;  %v371_v3 = vmul.f32 %v355_v51, %v1142_v37 }
  0xc3   :  { %415 = vmatpush.xpose.msra.mxu0 %v390_v58  ;;  %v372_v63 = vmul.f32 %v356_v57, %v340_v61  ;;  %v386_v6 = vadd.f32 %v370_v4, %v1148_v40  ;;  %v724_v40 = vmul.f32 %v723_v36, %v1146_v39 }
  0xc4   :  { %v752_v14 = vrot.slane %v751_v11, 2  ;;  %820 = vpush %v698_v12  ;;  %v387_v60 = vadd.f32 %v371_v3, %v1151_v41 }
  0xc5   :  { %v388_v27 = vadd.f32 %v372_v63, %v100_v1  ;;  %v725_v12 = vadd.f32 %v724_v40, %v1156_v42 }
  0xc6   :  { %v753_v24 = vadd.f32 %v752_v14, %v751_v11 }
  0xc7   :  { %416 = vmatpush.xpose.msra.mxu0 %v389_v62  ;;  %v728_v2 = vperm.slane %v725_v12, 0 }
  0xc8   :  { %v754_v25 = vrot.slane %v753_v24, 1 }
  0xca   :  { %v755_v38 = vadd.f32 %v754_v25, %v753_v24 }
  0xcb   :  { %417 = vmatpush.xpose.msra.mxu0 %v388_v27 }
  0xcc   :  { %822 = vpush %v755_v38 }
  0xcf   :  { %418 = vmatpush.xpose.msra.mxu0 %v387_v60 }
  0xd3   :  { %419 = vmatpush.xpose.msra.mxu0 %v386_v6 }
  0xd6   :  { %420 = vmatmul.f32.vlgmr.msra.gmra.mxu0 %v403_v32 }
  0xf5   :  { %s821_s4 = spop %820 }
  0xf6   :  { %v700_v5 = vstv %s821_s4 }
  0xf7   :  { %v701_v10 = vadd.f32 %v700_v5, %v675_v8 }
  0xf9   :  { %703 = vst.msk [vmem:[#allocation3] sm:$0x1] %vm96_vm15, %v701_v10 }
  0xfd   :  { %s823_s26 = spop %822 }
  0xfe   :  { %v757_v41 = vstv %s823_s26 }
 0x100   :  { %v745_v37 = vld [vmem:[#allocation3] sm:$0x1] }
 0x101   :  { %v758_v11 = vadd.f32 %v757_v41, %v745_v37 }
 0x103   :  { %762 = vperm.xlu1 %834, %v758_v11  }
 0x153   :  { %v421_v13 = vpop.f32.mrf.mxu0 }
 0x154   :  { %v730_v16 = vadd.f32 %v728_v2, %v421_v13 }
 0x156   :  { %731 = vst [vmem:[#allocation12] sm:$0xff] %v730_v16 }
 0x157   :  { %778 = dma.vmem_to_hbm [thread:$0]  %s774_s30, 128, %s776_s11, [#allocation6]  }
 0x175   :  { %v763_v39 = vpop.permute.xlu1 %762 }
 0x176   :  { %v765_v42 = vperm.slane %v763_v39, 0 }
 0x178   :  { %v766_v17 = vsel %vm759_vm6, %v765_v42, 0.0 }
 0x179   :  { %767 = vst [vmem:[#allocation13] sm:$0x1] %v766_v17 }
 0x17a   :  { %789 = dma.vmem_to_hbm [thread:$0]  %s785_s13, 16, %s787_s15, [#allocation14]  }
 0x17b   :  { %1060 = dma.done.wait [#allocation6], 128  }
 0x17c   :  { %1061 = vsyncadd [#allocation6], 4294967168 }
 0x17d   :  { %1062 = dma.done.wait [#allocation14], 16  }
 0x17e   :  { %1063 = vsyncadd [#allocation14], 4294967280 }
 0x17f   :  { %798 = vsyncpa [#allocation5], 1 }
 0x180   :  { %799 = vsyncpa [#allocation8], 1 }
 0x181   :  { %800 = vsyncpa [#allocation11], 1 }
 0x182   :  { %801 = vsyncpa [#allocation6], 1 }
 0x183   :  { %802 = vsyncpa [#allocation14], 1 }

</bundles_post_ra>
